<compile_context>
chip_gen: v6e
topology: v6e:2x2x1
jax: 0.10.0
libtpu: 0.0.40
codegen_flags: <defaults>
</compile_context>

<pallas_src>
import functools

import jax
import jax.numpy as jnp
from jax.experimental import pallas as pl
from jax.experimental.pallas import tpu as pltpu


# ----------------------------------------------------------------------------
# Fused kernel: ConvTranspose(2,2,0) as matmul + BN bias + SiLU
# ----------------------------------------------------------------------------
def _convt_bn_silu_kernel(x_ref, w_ref, b_ref, o_ref):
    # x_ref: (C1, THW)    one image, channels on sublanes, spatial on lanes (bf16)
    # w_ref: (4*C2, C1)   weight with the 2x2 kernel positions stacked on rows,
    #                     BN scale pre-folded (bf16)
    # b_ref: (4*C2, 1)    folded BN bias (f32)
    # o_ref: (4*C2, THW)  lane-dense output slab
    y = jnp.dot(w_ref[...], x_ref[...], preferred_element_type=jnp.float32)
    y = y + b_ref[...]
    # SiLU: y * sigmoid(y); reciprocal goes to the EUP slot (approx vrcp).
    sig = pl.reciprocal(1.0 + jnp.exp(-y), approx=True)
    o_ref[...] = (y * sig).astype(o_ref.dtype)


def conv_transpose_bn_silu(x_nchw, w_pt, scale, bias, *,
                           out_dtype=jnp.float32, max_thw=None):
    """Fused ConvTranspose2d(k=2, s=2, p=0, bias=False) + folded BN + SiLU.

    x_nchw: (N, C1, H, W)
    w_pt  : (C1, C2, 2, 2) PyTorch ConvTranspose2d weight layout
    scale, bias: (C2,) folded BatchNorm parameters
    returns: (N, C2, 2H, 2W) in `out_dtype` (f32 by default; pass bf16 if the
             downstream network tolerates it to halve the write stream).
    """
    N, C1, H, W = x_nchw.shape
    C2 = w_pt.shape[1]
    Cout = 4 * C2
    HW = H * W

    # --- weight: fold BN scale, reorder (ci,co,kh,kw) -> (kh,kw,co,ci), bf16 ---
    w_scaled = w_pt.astype(jnp.float32) * scale[None, :, None, None]
    w_big = jnp.transpose(w_scaled, (2, 3, 1, 0)).reshape(Cout, C1)
    w_big = w_big.astype(jnp.bfloat16)
    b_big = jnp.tile(bias, 4).reshape(Cout, 1).astype(jnp.float32)

    # --- x: NCHW viewed as (N, C1, H*W); no transpose pass, cast to bf16 -----
    x3 = x_nchw.reshape(N, C1, HW).astype(jnp.bfloat16)

    in_bytes = 2
    out_bytes = jnp.dtype(out_dtype).itemsize

    # --- spatial tile: lane-dense (multiple of 128), channel-aware sizing ----
    bytes_per_col = C1 * in_bytes + Cout * out_bytes
    thw = (4 * 1024 * 1024) // max(1, bytes_per_col)      # ~4 MiB per grid step
    thw = max(128, min(thw, 16384, pl.cdiv(HW, 128) * 128))
    thw = (thw // 128) * 128
    if max_thw is not None:
        thw = min(thw, max(128, (max_thw // 128) * 128))

    # Keep double-buffered x/out tiles + (double-buffered) resident weight well
    # under the scoped VMEM budget on every generation.
    def _vmem_need(t):
        return (2 * C1 * t * in_bytes            # x tiles (double-buffered)
                + 2 * Cout * t * out_bytes       # out tiles (double-buffered)
                + 2 * (Cout * C1 * 2 + Cout * 4))  # weight + bias
    budget = 24 * 1024 * 1024
    while thw > 128 and _vmem_need(thw) > budget:
        thw = max(128, ((thw // 2) // 128) * 128)
    # TODO(synk): for very large C1*C2 (weight no longer VMEM-resident) add a
    # second tiled grid axis over Cout; pl.Buffered(1) on the constant-index
    # weight spec would also halve its VMEM footprint.

    HWp = pl.cdiv(HW, thw) * thw
    if HWp != HW:
        x3 = jnp.pad(x3, ((0, 0), (0, 0), (0, HWp - HW)))

    grid = (N, HWp // thw)
    cost = pl.CostEstimate(
        flops=2 * N * HW * C1 * Cout,
        transcendentals=N * HW * Cout,
        bytes_accessed=(N * HWp * (C1 * in_bytes + Cout * out_bytes)
                        + Cout * C1 * 2 + Cout * 4),
    )

    out3 = pl.pallas_call(
        _convt_bn_silu_kernel,
        out_shape=jax.ShapeDtypeStruct((N, Cout, HWp), out_dtype),
        grid=grid,
        in_specs=[
            pl.BlockSpec((None, C1, thw), lambda n, t: (n, 0, t)),
            pl.BlockSpec((Cout, C1), lambda n, t: (0, 0)),
            pl.BlockSpec((Cout, 1), lambda n, t: (0, 0)),
        ],
        out_specs=pl.BlockSpec((None, Cout, thw), lambda n, t: (n, 0, t)),
        compiler_params=pltpu.CompilerParams(
            dimension_semantics=("parallel", "parallel"),
            vmem_limit_bytes=32 * 1024 * 1024),
        cost_estimate=cost,
    )(x3, w_big, b_big)

    # (N, 4*C2, HW) -> (N, 2, 2, C2, H, W) -> (N, C2, H, 2, W, 2) -> NCHW.
    out3 = out3[:, :, :HW]
    out = out3.reshape(N, 2, 2, C2, H, W)
    out = jnp.transpose(out, (0, 3, 4, 1, 5, 2)).reshape(N, C2, 2 * H, 2 * W)
    return out


# ----------------------------------------------------------------------------
# BN folding (inference mode, running stats)
# ----------------------------------------------------------------------------
def fold_bn(gamma, beta, mean, var, eps=1e-5):
    scale = gamma * jax.lax.rsqrt(var + eps)
    bias = beta - mean * scale
    return scale, bias


# ----------------------------------------------------------------------------
# Reference (pure JAX) and demo / self-check
# ----------------------------------------------------------------------------
def _reference(x, w, scale, bias, K=2, S=2, P=0):
    # ConvTranspose2d == input-dilated conv with the spatially flipped,
    # channel-swapped kernel.
    w_oihw = jnp.transpose(jnp.flip(w, axis=(2, 3)), (1, 0, 2, 3))
    ref = jax.lax.conv_general_dilated(
        x, w_oihw, window_strides=(1, 1),
        padding=((K - 1 - P, K - 1 - P), (K - 1 - P, K - 1 - P)),
        lhs_dilation=(S, S),
        dimension_numbers=("NCHW", "OIHW", "NCHW"))
    ref = ref * scale[None, :, None, None] + bias[None, :, None, None]
    return ref * jax.nn.sigmoid(ref)


def _check(x, w, scale, bias, max_thw=None, tol=3e-2):
    fwd = jax.jit(functools.partial(conv_transpose_bn_silu, max_thw=max_thw))
    out = jax.block_until_ready(fwd(x, w, scale, bias))
    N, C1, H, W = x.shape
    C2 = w.shape[1]
    assert out.shape == (N, C2, 2 * H, 2 * W), out.shape
    ref = _reference(x, w, scale, bias)
    err = float(jnp.max(jnp.abs(out - ref)))
    assert jnp.allclose(out, ref, atol=tol, rtol=tol), err
    return err


if __name__ == "__main__":
    key = jax.random.PRNGKey(0)
    kx, kw, kg, kb, km, kv, kx2, kw2 = jax.random.split(key, 8)

    # Canonical small shapes consistent with the module.
    N, C1, H, W = 2, 4, 16, 16
    C2 = 8

    x = jax.random.normal(kx, (N, C1, H, W), jnp.float32)
    w = jax.random.normal(kw, (C1, C2, 2, 2), jnp.float32) * 0.1
    gamma = 1.0 + 0.1 * jax.random.normal(kg, (C2,), jnp.float32)
    beta = 0.1 * jax.random.normal(kb, (C2,), jnp.float32)
    mean = 0.1 * jax.random.normal(km, (C2,), jnp.float32)
    var = 1.0 + 0.1 * jnp.abs(jax.random.normal(kv, (C2,), jnp.float32))
    scale, bias = fold_bn(gamma, beta, mean, var)

    # 1) default tiling; 2) force multiple spatial tiles (exercise the grid).
    _check(x, w, scale, bias)
    _check(x, w, scale, bias, max_thw=128)

    # 3) ragged spatial size -> exercises the HW padding + slice-off path.
    x2 = jax.random.normal(kx2, (1, 8, 9, 9), jnp.float32)
    w2 = jax.random.normal(kw2, (8, 4, 2, 2), jnp.float32) * 0.1
    s2, b2 = fold_bn(jnp.ones((4,)), jnp.zeros((4,)),
                     jnp.zeros((4,)), jnp.ones((4,)))
    _check(x2, w2, s2, b2)

    print("KERNEL_OK")
</pallas_src>

<mosaic_0001>
module attributes {stable_mosaic.version = 11 : i64} {
  func.func @_convt_bn_silu_kernel(%arg0: i32, %arg1: i32, %arg2: memref<1x4x256xbf16, #tpu.memory_space<vmem>>, %arg3: memref<32x4xbf16, #tpu.memory_space<vmem>>, %arg4: memref<32x1xf32, #tpu.memory_space<vmem>>, %arg5: memref<1x32x256xf32, #tpu.memory_space<vmem>>) attributes {dimension_semantics = [#tpu.dimension_semantics<parallel>, #tpu.dimension_semantics<parallel>], iteration_bounds = array<i64: 2, 1>, scalar_prefetch = 0 : i64, scratch_operands = 0 : i64, tpu.core_type = #tpu.core_type<tc>, window_params = [{transform_indices = @transform_0, window_bounds = array<i64: 1, 4, 256>}, {pipeline_mode = #tpu.pipeline_mode<synchronous>, transform_indices = @transform_1, window_bounds = array<i64: 32, 4>}, {pipeline_mode = #tpu.pipeline_mode<synchronous>, transform_indices = @transform_2, window_bounds = array<i64: 32, 1>}, {transform_indices = @transform_3, window_bounds = array<i64: 1, 32, 256>}]} {
    %c0 = arith.constant 0 : index
    %c0_0 = arith.constant 0 : index
    %0 = vector.load %arg3[%c0, %c0_0] : memref<32x4xbf16, #tpu.memory_space<vmem>>, vector<32x4xbf16>
    %c0_1 = arith.constant 0 : index
    %c0_2 = arith.constant 0 : index
    %c0_3 = arith.constant 0 : index
    %1 = vector.load %arg2[%c0_1, %c0_2, %c0_3] : memref<1x4x256xbf16, #tpu.memory_space<vmem>>, vector<1x4x256xbf16>
    %2 = vector.shape_cast %1 : vector<1x4x256xbf16> to vector<4x256xbf16>
    %cst = arith.constant dense<0.000000e+00> : vector<32x256xf32>
    %3 = tpu.matmul %0, %2, %cst {dimension_numbers = #tpu.dot_dimension_numbers<[1], [0], [0], [1], [0, 0, 1, 1], [], []>} : vector<32x4xbf16>, vector<4x256xbf16>, vector<32x256xf32> -> vector<32x256xf32>
    %c0_4 = arith.constant 0 : index
    %c0_5 = arith.constant 0 : index
    %4 = vector.load %arg4[%c0_4, %c0_5] : memref<32x1xf32, #tpu.memory_space<vmem>>, vector<32x1xf32>
    %5 = vector.broadcast %4 : vector<32x1xf32> to vector<32x256xf32>
    %6 = arith.addf %3, %5 : vector<32x256xf32>
    %cst_6 = arith.constant 0.000000e+00 : f32
    %7 = vector.broadcast %cst_6 : f32 to vector<32x256xf32>
    %8 = arith.subf %7, %6 : vector<32x256xf32>
    %9 = math.exp %8 : vector<32x256xf32>
    %cst_7 = arith.constant 1.000000e+00 : f32
    %10 = vector.broadcast %cst_7 : f32 to vector<32x256xf32>
    %11 = arith.addf %10, %9 : vector<32x256xf32>
    %12 = tpu.reciprocal %11 {approx = true} : vector<32x256xf32> -> vector<32x256xf32>
    %13 = arith.mulf %6, %12 : vector<32x256xf32>
    %c0_8 = arith.constant 0 : index
    %c0_9 = arith.constant 0 : index
    %c0_10 = arith.constant 0 : index
    %14 = vector.load %arg5[%c0_8, %c0_9, %c0_10] : memref<1x32x256xf32, #tpu.memory_space<vmem>>, vector<1x32x256xf32>
    %15 = vector.shape_cast %14 : vector<1x32x256xf32> to vector<32x256xf32>
    %16 = vector.shape_cast %13 : vector<32x256xf32> to vector<1x32x256xf32>
    tpu.vector_store %arg5[%c0_8, %c0_9, %c0_10], %16 {strides = array<i32>} : memref<1x32x256xf32, #tpu.memory_space<vmem>>, vector<1x32x256xf32>,
    return
  }
  func.func @transform_0(%arg0: i32, %arg1: i32) -> (i32, i32, i32) {
    %c0_i32 = arith.constant 0 : i32
    %c0_i32_0 = arith.constant 0 : i32
    return %arg0, %c0_i32, %arg1 : i32, i32, i32
  }
  func.func @transform_1(%arg0: i32, %arg1: i32) -> (i32, i32) {
    %c0_i32 = arith.constant 0 : i32
    %c0_i32_0 = arith.constant 0 : i32
    %c0_i32_1 = arith.constant 0 : i32
    return %c0_i32, %c0_i32_0 : i32, i32
  }
  func.func @transform_2(%arg0: i32, %arg1: i32) -> (i32, i32) {
    %c0_i32 = arith.constant 0 : i32
    %c0_i32_0 = arith.constant 0 : i32
    %c0_i32_1 = arith.constant 0 : i32
    return %c0_i32, %c0_i32_0 : i32, i32
  }
  func.func @transform_3(%arg0: i32, %arg1: i32) -> (i32, i32, i32) {
    %c0_i32 = arith.constant 0 : i32
    %c0_i32_0 = arith.constant 0 : i32
    return %arg0, %c0_i32, %arg1 : i32, i32, i32
  }
}

</mosaic_0001>

<bundles_post_ra>
// kernel: tile.8
= control target key start
LH: loop header
LB: loop body
LE: loop exit
PB: predicated region body
PF: predicated region fallthrough
CT: control target
= control target key end

     0   :  { %s22_s0 = inlined_call_operand.vmem [shape: f32[8], index: 0, kind: input, shape index: {}]   ;;  %s23_s1 = inlined_call_operand.vmem [shape: f32[4,8], index: 1, kind: output, shape index: {}]  }
   0x1   :  { %v4_v0 = vld [vmem:[%s22_s0] ss:$0 sm:$0xff] }
   0x2   :  { %5 = vst [vmem:[%s23_s1] sm:$0xf] %v4_v0 }

// kernel: tile.0
= control target key start
LH: loop header
LB: loop body
LE: loop exit
PB: predicated region body
PF: predicated region fallthrough
CT: control target
= control target key end

     0   :  { %s67_s8 = smov 125   ;;  %vm8_vm0 = vcmask 7168   ;;  %s68_s11 = smov 126   ;;  %s118_s0 = inlined_call_operand.vmem [shape: f32[4,8], index: 0, kind: input, shape index: {}]   ;;  %s119_s1 = inlined_call_operand.vmem [shape: f32[32,1], index: 1, kind: output, shape index: {}]  }
   0x1   :  { %v5_v0 = vld [vmem:[%s118_s0] sm:$0xf]  ;;  %s66_s0 = smov 127   ;;  %s69_s12 = smov 124  }
   0x2   :  { %6 = vst [vmem:[#allocation0] sm:$0xf] %v5_v0  ;;  %s70_s13 = smov 123   ;;  %s71_s14 = smov 122  }
   0x3   :  { %s72_s15 = smov 121  }
   0x9   :  { %v10_v1 = vld [vmem:[#allocation0] sm:$0xf]  }
   0xa   :  { %v22_v2 = vld [vmem:[#allocation0] sm:$0xf]   ;;  %11 = vrot.lane.b32.xlu0 %v10_v1, %s66_s0 }
   0xb   :  { %23 = vrot.lane.b32.xlu1 %v22_v2, %s67_s8  ;;  %v16_v3 = vld [vmem:[#allocation0] sm:$0xf]  }
   0xc   :  { %v28_v4 = vld [vmem:[#allocation0] sm:$0xf]  }
   0xd   :  { %v7_v5 = vld [vmem:[#allocation0] sm:$0xf]  }
   0xe   :  { %9 = vst.msk [vmem:[%s119_s1] ss:$8 sm:$0xf] %vm8_vm0, %v7_v5   ;;  %17 = vrot.lane.b32.xlu0 %v16_v3, %s68_s11  ;;  %v34_v6 = vld [vmem:[#allocation0] sm:$0xf]  }
   0xf   :  { %29 = vrot.lane.b32.xlu1 %v28_v4, %s69_s12  ;;  %v40_v7 = vld [vmem:[#allocation0] sm:$0xf]  }
  0x10   :  { %v46_v8 = vld [vmem:[#allocation0] sm:$0xf]  }
  0x12   :  { %35 = vrot.lane.b32.xlu0 %v34_v6, %s70_s13 }
  0x13   :  { %41 = vrot.lane.b32.xlu1 %v40_v7, %s71_s14 }
  0x16   :  { %47 = vrot.lane.b32.xlu0 %v46_v8, %s72_s15 }
  0x7c   :  { %v12_v9 = vpop.permute.xlu0 %11  }
  0x7d   :  { %v24_v10 = vpop.permute.xlu1 %23   ;;  %52 = vst.msk [vmem:[%s119_s1 + $0x1] ss:$8 sm:$0xf] %vm8_vm0, %v12_v9  }
  0x7e   :  { %54 = vst.msk [vmem:[%s119_s1 + $0x3] ss:$8 sm:$0xf] %vm8_vm0, %v24_v10  }
  0x80   :  { %v18_v11 = vpop.permute.xlu0 %17  }
  0x81   :  { %v30_v12 = vpop.permute.xlu1 %29   ;;  %53 = vst.msk [vmem:[%s119_s1 + $0x2] ss:$8 sm:$0xf] %vm8_vm0, %v18_v11  }
  0x82   :  { %55 = vst.msk [vmem:[%s119_s1 + $0x4] ss:$8 sm:$0xf] %vm8_vm0, %v30_v12  }
  0x84   :  { %v36_v13 = vpop.permute.xlu0 %35  }
  0x85   :  { %v42_v14 = vpop.permute.xlu1 %41   ;;  %56 = vst.msk [vmem:[%s119_s1 + $0x5] ss:$8 sm:$0xf] %vm8_vm0, %v36_v13  }
  0x86   :  { %57 = vst.msk [vmem:[%s119_s1 + $0x6] ss:$8 sm:$0xf] %vm8_vm0, %v42_v14  }
  0x88   :  { %v48_v15 = vpop.permute.xlu0 %47  }
  0x89   :  { %58 = vst.msk [vmem:[%s119_s1 + $0x7] ss:$8 sm:$0xf] %vm8_vm0, %v48_v15  }

// kernel: conv_transpose_bn_silu.1
= control target key start
LH: loop header
LB: loop body
LE: loop exit
PB: predicated region body
PF: predicated region fallthrough
CT: control target
= control target key end

     0   :  { %s596_s12 = smov 0   ;;  %s598_s13 = smov 0   ;;  %s675_s0 = inlined_call_operand.vmem [shape: bf16[2,4,256], index: 0, kind: input, shape index: {}]   ;;  %s676_s1 = inlined_call_operand.vmem [shape: bf16[32,4], index: 1, kind: input, shape index: {}]   ;;  %s677_s2 = inlined_call_operand.vmem [shape: f32[32,1], index: 2, kind: input, shape index: {}]   ;;  %s678_s3 = inlined_call_operand.vmem [shape: f32[2,32,256], index: 3, kind: output, shape index: {}]  }
   0x1   :  { %s600_s14 = smov 0  }
   0x2 LB: > { %s25_s15 = sadd.s32 1, %s569_s13  ;;  %p473_p0 = scmp.ge.s32.totalorder %s573_s14, 1  ;;  %s573_s14 = sphi %s600_s14, %s13_s14   ;;  %s569_s13 = sphi %s598_s13, %s680_s13   ;;  %s565_s12 = sphi %s596_s12, %s679_s12  }
   0x3   : > { %p27_p1 = scmp.ge.s32.totalorder %s25_s15, 2  ;;  %p158_p2 = scmp.lt.s32.totalorder %s573_s14, 3 }
   0x5   : > { %s682_s15 = smov (%p27_p1, %s25_s15), 0  ;;  %p159_p3 = pnand %p473_p0, %p158_p2 }
   0x6   : > { %p191_p4 = scmp.lt.s32.totalorder (!%p159_p3), %s565_s12, 1 }
   0x7   : > { %162 = sbr.rel (%p159_p3) target bundleno = 263 (0x107), region = 32 }
   0xc   : > { %v575_v0 = vmov 0   ;;  %s684_s12 = smov (!%p191_p4, %s565_s12), 1  ;;  %v218_v1 = vld [vmem:[%s677_s2 + $0x10] sm:$0xff]  ;;  %v216_v2 = vld [vmem:[%s677_s2] sm:$0xff]  ;;  %vm266_vm0 = vcmask 1041408   ;;  %v219_v3 = vld [vmem:[%s677_s2 + $0x18] sm:$0xff] }
   0xd   : > { %305 = vmatprep.mubr.bf16.mxu0 %v575_v0  ;;  %315 = vmatprep.mubr.bf16.mxu1 %v575_v0  ;;  %s486_s20 = sshll.u32 %s684_s12, 2  ;;  %v217_v4 = vld [vmem:[%s677_s2 + $0x8] sm:$0xff]  ;;  %v517_v8 = vld [vmem:[%s676_s1] sm:$0xff]   ;;  %vm259_vm1 = vcmask 31744   ;;  %s487_s5 = sshll.u32 %s684_s12, 6 }
   0xe   : > { %516 = vset.pattern.permute.xlu1 %v575_v0  ;;  %515 = vset.pattern.permute.xlu0 %v575_v0  ;;  %s198_s27 = scalar_lea.vmem %s675_s0, %s486_s20  ;;  %v518_v9 = vld [vmem:[%s676_s1 + $0x8] sm:$0xff]   ;;  %s208_s8 = scalar_lea.vmem %s678_s3, %s487_s5 }
   0xf   : > { %232 = vperm.xlu1 %516, %v218_v1   ;;  %222 = vperm.xlu0 %515, %v216_v2   ;;  %v480_v5 = vld.sshfl [vmem:[%s198_s27] sm:$0x33 pattern:$0x76325410] }
  0x10   : > { %v258_v6 = vcombine.high %v480_v5, %v480_v5  ;;  %v268_v7 = vsel %vm266_vm0, %v480_v5, 0 }
  0x12   : > { %481 = vmatprep.subr.msk.bf16.mxu0 %vm266_vm0, %v258_v6  ;;  %488 = vmatprep.subr.msk.bf16.mxu1 %vm266_vm0, %v258_v6 }
  0x13   : > { %237 = vperm.xlu1 %516, %v219_v3   ;;  %227 = vperm.xlu0 %515, %v217_v4  }
  0x14   : > { %288 = vmatpush1.bf16.msra.mxu0 %v268_v7  ;;  %489 = vmatpush1.bf16.msra.mxu1 %v268_v7 }
  0x17   : > { %482 = vmatmul.mubr.msk.bf16.vlgmr.msra.gmra.mxu0 %vm259_vm1, %v517_v8  ;;  %483 = vmatmul.mubr.msk.bf16.vlgmr.msra.gmra.mxu1 %vm259_vm1, %v518_v9 }
  0x8a   : > { %v233_v10 = vpop.permute.xlu1 %232  ;;  %v223_v11 = vpop.permute.xlu0 %222 }
  0x8e   : > { %v238_v26 = vpop.permute.xlu1 %237  ;;  %v228_v27 = vpop.permute.xlu0 %227 }
  0xd7   : > { %v307_v12 = vpop.f32.mrf.mxu0  ;;  %v317_v13 = vpop.f32.mrf.mxu1 }
  0xd8   : > { %v638_v14 = vadd.f32 %v307_v12, %v223_v11  ;;  %v640_v15 = vadd.f32 %v317_v13, %v233_v10 }
  0xd9   : > { %v309_v16 = vpop.f32.mrf.mxu0  ;;  %v319_v17 = vpop.f32.mrf.mxu1 }
  0xda   : > { %v326_v18 = vsub.f32 0.0, %v638_v14  ;;  %v330_v19 = vsub.f32 0.0, %v640_v15  ;;  %v644_v20 = vadd.f32 %v309_v16, %v223_v11  ;;  %v646_v21 = vadd.f32 %v319_v17, %v233_v10 }
  0xdb   : > { %v311_v22 = vpop.f32.mrf.mxu0  ;;  %v321_v23 = vpop.f32.mrf.mxu1 }
  0xdc   : > { %v334_v24 = vmul.f32 1.442695, %v326_v18  ;;  %v342_v25 = vmul.f32 1.442695, %v330_v19  ;;  %v327_v28 = vsub.f32 0.0, %v644_v20  ;;  %v331_v29 = vsub.f32 0.0, %v646_v21 }
  0xdd   : > { %v650_v30 = vadd.f32 %v311_v22, %v228_v27  ;;  %v652_v31 = vadd.f32 %v321_v23, %v238_v26  ;;  %v313_v32 = vpop.f32.mrf.mxu0  ;;  %v323_v33 = vpop.f32.mrf.mxu1 }
  0xde   : > { %519 = vpow2.f32 %v334_v24  ;;  %v336_v34 = vmul.f32 1.442695, %v327_v28  ;;  %v344_v35 = vmul.f32 1.442695, %v331_v29  ;;  %v314_v36 = vadd.f32 %v313_v32, %v228_v27 }
  0xdf   : > { %521 = vpow2.f32 %v342_v25  ;;  %v328_v37 = vsub.f32 0.0, %v650_v30  ;;  %v332_v38 = vsub.f32 0.0, %v652_v31  ;;  %v324_v39 = vadd.f32 %v323_v33, %v238_v26 }
  0xe0   : > { %523 = vpow2.f32 %v336_v34  ;;  %v329_v40 = vsub.f32 0.0, %v314_v36 }
  0xe1   : > { %525 = vpow2.f32 %v344_v35  ;;  %v338_v41 = vmul.f32 1.442695, %v328_v37  ;;  %v346_v42 = vmul.f32 1.442695, %v332_v38  ;;  %v333_v43 = vsub.f32 0.0, %v324_v39 }
  0xe2   : > { %v340_v44 = vmul.f32 1.442695, %v329_v40 }
  0xe3   : > { %527 = vpow2.f32 %v338_v41  ;;  %v348_v45 = vmul.f32 1.442695, %v333_v43 }
  0xe4   : > { %529 = vpow2.f32 %v346_v42 }
  0xe5   : > { %531 = vpow2.f32 %v340_v44 }
  0xe6   : > { %533 = vpow2.f32 %v348_v45 }
  0xeb   : > { %v520_v46 = vpop.eup %519 }
  0xec   : > { %v522_v47 = vpop.eup %521  ;;  %v350_v48 = vadd.f32 1.0, %v520_v46 }
  0xed   : > { %v524_v49 = vpop.eup %523  ;;  %v354_v50 = vadd.f32 1.0, %v522_v47 }
  0xee   : > { %v526_v51 = vpop.eup %525  ;;  %535 = vrcp.f32 %v350_v48  ;;  %v351_v52 = vadd.f32 1.0, %v524_v49 }
  0xef   : > { %537 = vrcp.f32 %v354_v50  ;;  %v355_v53 = vadd.f32 1.0, %v526_v51 }
  0xf0   : > { %v528_v54 = vpop.eup %527  ;;  %539 = vrcp.f32 %v351_v52 }
  0xf1   : > { %v530_v55 = vpop.eup %529  ;;  %541 = vrcp.f32 %v355_v53  ;;  %v352_v56 = vadd.f32 1.0, %v528_v54 }
  0xf2   : > { %v532_v57 = vpop.eup %531  ;;  %v356_v58 = vadd.f32 1.0, %v530_v55 }
  0xf3   : > { %v534_v59 = vpop.eup %533  ;;  %543 = vrcp.f32 %v352_v56  ;;  %v353_v60 = vadd.f32 1.0, %v532_v57 }
  0xf4   : > { %545 = vrcp.f32 %v356_v58  ;;  %v357_v61 = vadd.f32 1.0, %v534_v59 }
  0xf5   : > { %547 = vrcp.f32 %v353_v60 }
  0xf6   : > { %549 = vrcp.f32 %v357_v61 }
  0xfb   : > { %v536_v62 = vpop.eup %535 }
  0xfc   : > { %v538_v63 = vpop.eup %537  ;;  %v366_v0 = vmul.f32 %v536_v62, %v638_v14 }
  0xfd   : > { %v540_v1 = vpop.eup %539  ;;  %v370_v2 = vmul.f32 %v538_v63, %v640_v15 }
  0xfe   : > { %v542_v3 = vpop.eup %541  ;;  %374 = vst [vmem:[%s208_s8] sm:$0xff] %v366_v0  ;;  %v367_v4 = vmul.f32 %v540_v1, %v644_v20 }
  0xff   : > { %378 = vst [vmem:[%s208_s8 + $0x20] sm:$0xff] %v370_v2  ;;  %v371_v5 = vmul.f32 %v542_v3, %v646_v21 }
 0x100   : > { %v544_v6 = vpop.eup %543  ;;  %375 = vst [vmem:[%s208_s8 + $0x8] sm:$0xff] %v367_v4 }
 0x101   : > { %v546_v7 = vpop.eup %545  ;;  %379 = vst [vmem:[%s208_s8 + $0x28] sm:$0xff] %v371_v5  ;;  %v368_v8 = vmul.f32 %v544_v6, %v650_v30 }
 0x102   : > { %v548_v9 = vpop.eup %547  ;;  %v372_v10 = vmul.f32 %v546_v7, %v652_v31 }
 0x103   : > { %v550_v11 = vpop.eup %549  ;;  %376 = vst [vmem:[%s208_s8 + $0x10] sm:$0xff] %v368_v8  ;;  %v369_v12 = vmul.f32 %v548_v9, %v314_v36 }
 0x104   : > { %380 = vst [vmem:[%s208_s8 + $0x30] sm:$0xff] %v372_v10  ;;  %v373_v13 = vmul.f32 %v550_v11, %v324_v39 }
 0x105   : > { %377 = vst [vmem:[%s208_s8 + $0x18] sm:$0xff] %v369_v12 }
 0x106   : > { %381 = vst [vmem:[%s208_s8 + $0x38] sm:$0xff] %v373_v13 }
 0x107 PF: > { %s13_s14 = sadd.s32 1, %s573_s14   ;;  %s679_s12 = smov %s569_s13 }
 0x108   : > { %p10_p5 = scmp.ge.s32.totalorder %s13_s14, 4   ;;  %s680_s13 = smov %s682_s15 }
 0x10a   :  { %12 = sbr.rel (!%p10_p5) target bundleno = 2 (0x2), region = 62 }

</bundles_post_ra>
